<compile_context>
chip_gen: v6e
topology: v6e:2x2x1
jax: 0.10.0
libtpu: 0.0.40
codegen_flags: <defaults>
</compile_context>

<pallas_src>
import functools
import math
from typing import NamedTuple, Optional

import jax
import jax.numpy as jnp
from jax.experimental import pallas as pl
from jax.experimental.pallas import tpu as pltpu


# ---------------------------------------------------------------------------
# Helpers
# ---------------------------------------------------------------------------
def _round_up(x, m):
    return (x + m - 1) // m * m


def _sublanes(dtype):
    return {4: 8, 2: 16, 1: 32}.get(jnp.dtype(dtype).itemsize, 8)


def _vmem_capacity_bytes():
    try:
        return int(pltpu.get_tpu_info().vmem_capacity_bytes)
    except Exception:
        return 64 * 1024 * 1024          # assume v7x worst case if query fails


def _block_bytes(tb, kh, tn, itemsize):
    """Per-buffer VMEM bytes for one grid step's blocks."""
    w = kh * 3 * tn * itemsize           # packed weight tile
    xh = tb * kh * itemsize              # [x | hx] batch tile
    bias = 8 * tn * 4                    # (8, TN) f32 bias tile
    out = tb * tn * itemsize             # output tile
    return w + xh + bias + out


def _select_tn(Hp, KH, itemsize, budget, nominal_tb=256):
    """Largest 128-multiple column tile dividing Hp whose double-buffered
    working set fits the VMEM budget."""
    for t in (1024, 512, 256, 128):
        if t <= Hp and Hp % t == 0:
            if 2 * _block_bytes(nominal_tb, KH, t, itemsize) * 1.35 <= budget:
                return t
    return 128


# ---------------------------------------------------------------------------
# Kernel
# ---------------------------------------------------------------------------
def _gru_cell_kernel(xh_ref, w_ref, b_ref, out_ref, *, kp):
    tn = out_ref.shape[-1]

    # Fused r/i gates: one MXU matmul over the stacked [x | hx] contraction dim
    # yields (i_r + h_r | i_i + h_i) directly.  f32 accumulation on the MXU,
    # operands stay in their native dtype.
    g_ri = jnp.dot(xh_ref[...], w_ref[:, 0:2 * tn],
                   preferred_element_type=jnp.float32)                 # (TB, 2TN)
    # n-gate parts kept separate: b_hh_n must stay inside resetgate * (...).
    i_n = jnp.dot(xh_ref[:, 0:kp], w_ref[0:kp, 2 * tn:3 * tn],
                  preferred_element_type=jnp.float32)                  # (TB, TN)
    h_n = jnp.dot(xh_ref[:, kp:], w_ref[kp:, 2 * tn:3 * tn],
                  preferred_element_type=jnp.float32)                  # (TB, TN)

    # Packed f32 bias rows: [b_ih_r+b_hh_r, b_ih_i+b_hh_i, b_ih_n, b_hh_n, 0...].
    b_r = b_ref[0:1, :]
    b_i = b_ref[1:2, :]
    b_in = b_ref[2:3, :]
    b_hn = b_ref[3:4, :]

    # sigmoid(z) = 0.5 * (tanh(z/2) + 1): one EUP push per gate (vs exp + div).
    resetgate = 0.5 * (jnp.tanh(0.5 * (g_ri[:, 0:tn] + b_r)) + 1.0)
    inputgate = 0.5 * (jnp.tanh(0.5 * (g_ri[:, tn:2 * tn] + b_i)) + 1.0)
    newgate = jnp.tanh(i_n + b_in + resetgate * (h_n + b_hn))

    # hx column tile: 128-aligned dynamic view into the resident [x|hx] block.
    col = pl.multiple_of(kp + pl.program_id(0) * tn, 128)
    hx_t = xh_ref[:, pl.ds(col, tn)].astype(jnp.float32)

    hy = newgate + inputgate * (hx_t - newgate)
    out_ref[...] = hy.astype(out_ref.dtype)


# ---------------------------------------------------------------------------
# One-time parameter packing (hoisted out of the per-step path)
# ---------------------------------------------------------------------------
class GRUCellParams(NamedTuple):
    w_packed: jax.Array      # (Kp+Hp, 3*Hp): per-TN-tile column groups [r|i|n]
    b_packed: jax.Array      # (8, Hp) f32: rows [b_r, b_i, b_ih_n, b_hh_n, 0,0,0,0]
    input_size: int
    hidden_size: int
    kp: int
    hp: int
    tn: int
    vmem_budget: int
    dtype: jnp.dtype


def prepare_gru_params(w_ih, w_hh, b_ih, b_hh, *, dtype=None, tn=None):
    """Pack GRUCell parameters once (one HBM pass) for repeated forward calls.

    w_ih : (3H, input_size)   PyTorch nn.Linear layout, gate rows [r; i; n]
    w_hh : (3H, hidden_size)
    b_ih, b_hh : (3H,)
    """
    H = w_ih.shape[0] // 3
    I = w_ih.shape[1]
    dtype = jnp.dtype(dtype if dtype is not None else w_ih.dtype)
    itemsize = dtype.itemsize

    Kp = _round_up(I, 128)            # padded input contraction dim
    Hp = _round_up(H, 128)            # padded hidden dim
    KH = Kp + Hp

    budget = int(_vmem_capacity_bytes() * 0.78)
    if tn is None:
        tn = _select_tn(Hp, KH, itemsize, budget)
    assert Hp % tn == 0 and tn % 128 == 0, "tn must be a 128-multiple dividing Hp"

    # --- weights: (Kp+Hp, 3*Hp).  For column tile t the 3*tn columns are
    #     [r_tile | i_tile | n_tile]; rows 0:Kp are the x contraction (W_ih^T),
    #     rows Kp:KH are the hx contraction (W_hh^T).  Zero padding contributes
    #     nothing to the matmuls.
    wih3 = jnp.pad(w_ih.reshape(3, H, I).astype(dtype),
                   ((0, 0), (0, Hp - H), (0, Kp - I)))                # (3, Hp, Kp)
    whh3 = jnp.pad(w_hh.reshape(3, H, H).astype(dtype),
                   ((0, 0), (0, Hp - H), (0, Hp - H)))                # (3, Hp, Hp)
    w3 = jnp.concatenate([wih3, whh3], axis=-1)                       # (3, Hp, KH)
    n_tiles = Hp // tn
    w3 = w3.reshape(3, n_tiles, tn, KH)
    w_packed = jnp.transpose(w3, (3, 1, 0, 2)).reshape(KH, 3 * Hp)    # (KH, 3*Hp)

    # --- biases (always f32): fold r/i pairs; keep the two n biases separate.
    bi3 = b_ih.reshape(3, H).astype(jnp.float32)
    bh3 = b_hh.reshape(3, H).astype(jnp.float32)
    b_rows = jnp.stack([bi3[0] + bh3[0], bi3[1] + bh3[1], bi3[2], bh3[2]])
    b_rows = jnp.pad(b_rows, ((0, 4), (0, Hp - H)))                   # (8, Hp)

    return GRUCellParams(w_packed, b_rows, I, H, Kp, Hp, tn, budget, dtype)


# ---------------------------------------------------------------------------
# Forward
# ---------------------------------------------------------------------------
def gru_cell_forward(params: GRUCellParams, x, hx=None, *, tb=None):
    """Pallas GRUCell forward.  x: (B, input_size); hx: (B, hidden_size) | None."""
    B, I = x.shape
    assert I == params.input_size
    H, Kp, Hp, TN = params.hidden_size, params.kp, params.hp, params.tn
    dtype = params.dtype
    itemsize = dtype.itemsize
    sub = _sublanes(dtype)

    TB = tb if tb is not None else min(256, _round_up(B, sub))
    TB = _round_up(TB, sub)
    Bp = _round_up(B, TB)

    # Per-step activation plumbing (tiny vs. the weight slabs).
    # NOTE: hx is cast to the compute dtype; with a bf16 compute dtype this
    # drops hidden-state precision each step (usually acceptable for GRUs).
    x_p = jnp.pad(x.astype(dtype), ((0, Bp - B), (0, Kp - I)))
    if hx is None:
        hx_p = jnp.zeros((Bp, Hp), dtype=dtype)   # matches the PyTorch module
    else:
        hx_p = jnp.pad(hx.astype(dtype), ((0, Bp - B), (0, Hp - H)))
    xh = jnp.concatenate([x_p, hx_p], axis=-1)                        # (Bp, Kp+Hp)

    n_col = Hp // TN
    grid = (n_col, Bp // TB)   # column tiles outer, batch tiles inner
    # >=2 column tiles: keep the column axis as the lone "parallel" axis so
    # megacore shards disjoint weight columns (not batch). Otherwise let the
    # batch axis be parallel.
    dims = ("parallel", "arbitrary") if n_col >= 2 else ("arbitrary", "parallel")

    need = int(2 * _block_bytes(TB, Kp + Hp, TN, itemsize) * 1.35)
    vmem_limit = int(min(max(need, 16 * 1024 * 1024), params.vmem_budget))

    out = pl.pallas_call(
        functools.partial(_gru_cell_kernel, kp=Kp),
        out_shape=jax.ShapeDtypeStruct((Bp, Hp), dtype),
        grid_spec=pltpu.PrefetchScalarGridSpec(
            num_scalar_prefetch=0,
            grid=grid,
            in_specs=[
                pl.BlockSpec((TB, Kp + Hp), lambda j, i: (i, 0)),      # [x | hx]
                pl.BlockSpec((Kp + Hp, 3 * TN), lambda j, i: (0, j)),  # packed weights
                pl.BlockSpec((8, TN), lambda j, i: (0, j)),            # packed biases
            ],
            out_specs=pl.BlockSpec((TB, TN), lambda j, i: (i, j)),
        ),
        compiler_params=pltpu.CompilerParams(
            dimension_semantics=dims,
            vmem_limit_bytes=vmem_limit,
        ),
    )(xh, params.w_packed, params.b_packed)

    return out[:B, :H]


def gru_cell(x, w_ih, w_hh, b_ih, b_hh, hx=None, *, tn=None, tb=None):
    """Convenience one-shot wrapper (packs params every call; prefer
    prepare_gru_params + gru_cell_forward for repeated use)."""
    params = prepare_gru_params(w_ih, w_hh, b_ih, b_hh, dtype=x.dtype, tn=tn)
    return gru_cell_forward(params, x, hx, tb=tb)


# ---------------------------------------------------------------------------
# Reference / init helpers
# ---------------------------------------------------------------------------
def init_gru_params(key, input_size, hidden_size, dtype=jnp.float32):
    """Deterministic init mirroring GRUCell.reset_parameters (uniform(-stdv, stdv))."""
    stdv = 1.0 / math.sqrt(hidden_size) if hidden_size > 0 else 0.0
    k1, k2, k3, k4 = jax.random.split(key, 4)
    w_ih = jax.random.uniform(k1, (3 * hidden_size, input_size), dtype, -stdv, stdv)
    w_hh = jax.random.uniform(k2, (3 * hidden_size, hidden_size), dtype, -stdv, stdv)
    b_ih = jax.random.uniform(k3, (3 * hidden_size,), dtype, -stdv, stdv)
    b_hh = jax.random.uniform(k4, (3 * hidden_size,), dtype, -stdv, stdv)
    return w_ih, w_hh, b_ih, b_hh


def gru_cell_ref(x, w_ih, w_hh, b_ih, b_hh, hx=None):
    """Pure-JAX reference matching the PyTorch forward semantics."""
    B = x.shape[0]
    H = w_ih.shape[0] // 3
    if hx is None:
        hx = jnp.zeros((B, H), dtype=x.dtype)
    gate_x = x @ w_ih.T + b_ih
    gate_h = hx @ w_hh.T + b_hh
    i_r, i_i, i_n = jnp.split(gate_x, 3, axis=-1)
    h_r, h_i, h_n = jnp.split(gate_h, 3, axis=-1)
    resetgate = jax.nn.sigmoid(i_r + h_r)
    inputgate = jax.nn.sigmoid(i_i + h_i)
    newgate = jnp.tanh(i_n + resetgate * h_n)
    return newgate + inputgate * (hx - newgate)


if __name__ == "__main__":
    key = jax.random.PRNGKey(0)

    # --- Test 1: module-scale shapes (batch=2, input=16, hidden=32) ----------
    batch, input_size, hidden_size = 2, 16, 32
    k_params, k_x, k_h, k2 = jax.random.split(key, 4)
    w_ih, w_hh, b_ih, b_hh = init_gru_params(k_params, input_size, hidden_size)
    x = jax.random.normal(k_x, (batch, input_size), jnp.float32)
    hx = jax.random.normal(k_h, (batch, hidden_size), jnp.float32)

    # Pack once, reuse across steps (the hoisted-prep path from the review).
    params = prepare_gru_params(w_ih, w_hh, b_ih, b_hh, dtype=jnp.float32)
    hy = jax.block_until_ready(gru_cell_forward(params, x, hx))
    hy0 = jax.block_until_ready(gru_cell_forward(params, x, None))

    ref = gru_cell_ref(x, w_ih, w_hh, b_ih, b_hh, hx)
    ref0 = gru_cell_ref(x, w_ih, w_hh, b_ih, b_hh, None)
    assert hy.shape == (batch, hidden_size)
    assert jnp.allclose(hy, ref, atol=1e-4, rtol=1e-4), "mismatch vs reference (hx given)"
    assert jnp.allclose(hy0, ref0, atol=1e-4, rtol=1e-4), "mismatch vs reference (hx=None)"

    # --- Test 2: multi-tile grid (padding + column/batch tiling paths) -------
    b2, i2, h2 = 20, 72, 300        # Kp=128, Hp=384 -> 3 column tiles; 3 batch tiles of 8
    kp2, kx2, kh2 = jax.random.split(k2, 3)
    w_ih2, w_hh2, b_ih2, b_hh2 = init_gru_params(kp2, i2, h2)
    x2 = jax.random.normal(kx2, (b2, i2), jnp.float32)
    hx2 = jax.random.normal(kh2, (b2, h2), jnp.float32)

    params2 = prepare_gru_params(w_ih2, w_hh2, b_ih2, b_hh2, dtype=jnp.float32, tn=128)
    hy2 = jax.block_until_ready(gru_cell_forward(params2, x2, hx2, tb=8))
    ref2 = gru_cell_ref(x2, w_ih2, w_hh2, b_ih2, b_hh2, hx2)
    assert hy2.shape == (b2, h2)
    assert jnp.allclose(hy2, ref2, atol=1e-4, rtol=1e-4), "mismatch vs reference (tiled)"

    # One-shot convenience path.
    hy3 = jax.block_until_ready(gru_cell(x, w_ih, w_hh, b_ih, b_hh, hx))
    assert jnp.allclose(hy3, ref, atol=1e-4, rtol=1e-4), "mismatch vs reference (one-shot)"

    print("KERNEL_OK")
</pallas_src>

<mosaic_0001>
module attributes {stable_mosaic.version = 11 : i64} {
  func.func @_gru_cell_kernel(%arg0: i32, %arg1: i32, %arg2: memref<8x256xf32, #tpu.memory_space<vmem>>, %arg3: memref<256x384xf32, #tpu.memory_space<vmem>>, %arg4: memref<8x128xf32, #tpu.memory_space<vmem>>, %arg5: memref<8x128xf32, #tpu.memory_space<vmem>>) attributes {dimension_semantics = [#tpu.dimension_semantics<arbitrary>, #tpu.dimension_semantics<parallel>], iteration_bounds = array<i64: 1, 1>, scalar_prefetch = 0 : i64, scratch_operands = 0 : i64, tpu.core_type = #tpu.core_type<tc>, window_params = [{transform_indices = @transform_0, window_bounds = array<i64: 8, 256>}, {transform_indices = @transform_1, window_bounds = array<i64: 256, 384>}, {transform_indices = @transform_2, window_bounds = array<i64: 8, 128>}, {transform_indices = @transform_3, window_bounds = array<i64: 8, 128>}]} {
    %c0 = arith.constant 0 : index
    %c0_0 = arith.constant 0 : index
    %0 = vector.load %arg2[%c0, %c0_0] : memref<8x256xf32, #tpu.memory_space<vmem>>, vector<8x256xf32>
    %c0_1 = arith.constant 0 : index
    %c0_2 = arith.constant 0 : index
    %1 = vector.load %arg3[%c0_1, %c0_2] : memref<256x384xf32, #tpu.memory_space<vmem>>, vector<256x256xf32>
    %cst = arith.constant dense<0.000000e+00> : vector<8x256xf32>
    %2 = tpu.matmul %0, %1, %cst {dimension_numbers = #tpu.dot_dimension_numbers<[1], [0], [0], [1], [0, 0, 1, 1], [], []>} : vector<8x256xf32>, vector<256x256xf32>, vector<8x256xf32> -> vector<8x256xf32>
    %c0_3 = arith.constant 0 : index
    %c0_4 = arith.constant 0 : index
    %3 = vector.load %arg2[%c0_3, %c0_4] : memref<8x256xf32, #tpu.memory_space<vmem>>, vector<8x128xf32>
    %c0_5 = arith.constant 0 : index
    %c256 = arith.constant 256 : index
    %4 = vector.load %arg3[%c0_5, %c256] : memref<256x384xf32, #tpu.memory_space<vmem>>, vector<128x128xf32>
    %cst_6 = arith.constant dense<0.000000e+00> : vector<8x128xf32>
    %5 = tpu.matmul %3, %4, %cst_6 {dimension_numbers = #tpu.dot_dimension_numbers<[1], [0], [0], [1], [0, 0, 1, 1], [], []>} : vector<8x128xf32>, vector<128x128xf32>, vector<8x128xf32> -> vector<8x128xf32>
    %c0_7 = arith.constant 0 : index
    %c128 = arith.constant 128 : index
    %6 = vector.load %arg2[%c0_7, %c128] : memref<8x256xf32, #tpu.memory_space<vmem>>, vector<8x128xf32>
    %c128_8 = arith.constant 128 : index
    %c256_9 = arith.constant 256 : index
    %7 = vector.load %arg3[%c128_8, %c256_9] : memref<256x384xf32, #tpu.memory_space<vmem>>, vector<128x128xf32>
    %cst_10 = arith.constant dense<0.000000e+00> : vector<8x128xf32>
    %8 = tpu.matmul %6, %7, %cst_10 {dimension_numbers = #tpu.dot_dimension_numbers<[1], [0], [0], [1], [0, 0, 1, 1], [], []>} : vector<8x128xf32>, vector<128x128xf32>, vector<8x128xf32> -> vector<8x128xf32>
    %c0_11 = arith.constant 0 : index
    %c0_12 = arith.constant 0 : index
    %9 = vector.load %arg4[%c0_11, %c0_12] : memref<8x128xf32, #tpu.memory_space<vmem>>, vector<1x128xf32>
    %c1 = arith.constant 1 : index
    %c0_13 = arith.constant 0 : index
    %10 = vector.load %arg4[%c1, %c0_13] : memref<8x128xf32, #tpu.memory_space<vmem>>, vector<1x128xf32>
    %c2 = arith.constant 2 : index
    %c0_14 = arith.constant 0 : index
    %11 = vector.load %arg4[%c2, %c0_14] : memref<8x128xf32, #tpu.memory_space<vmem>>, vector<1x128xf32>
    %c3 = arith.constant 3 : index
    %c0_15 = arith.constant 0 : index
    %12 = vector.load %arg4[%c3, %c0_15] : memref<8x128xf32, #tpu.memory_space<vmem>>, vector<1x128xf32>
    %13 = vector.extract_strided_slice %2 {offsets = [0, 0], sizes = [8, 128], strides = [1, 1]} : vector<8x256xf32> to vector<8x128xf32>
    %14 = vector.broadcast %9 : vector<1x128xf32> to vector<8x128xf32>
    %15 = arith.addf %13, %14 : vector<8x128xf32>
    %cst_16 = arith.constant 5.000000e-01 : f32
    %16 = vector.broadcast %cst_16 : f32 to vector<8x128xf32>
    %17 = arith.mulf %16, %15 : vector<8x128xf32>
    %18 = math.tanh %17 : vector<8x128xf32>
    %cst_17 = arith.constant 1.000000e+00 : f32
    %19 = vector.broadcast %cst_17 : f32 to vector<8x128xf32>
    %20 = arith.addf %18, %19 : vector<8x128xf32>
    %cst_18 = arith.constant 5.000000e-01 : f32
    %21 = vector.broadcast %cst_18 : f32 to vector<8x128xf32>
    %22 = arith.mulf %21, %20 : vector<8x128xf32>
    %23 = vector.extract_strided_slice %2 {offsets = [0, 128], sizes = [8, 128], strides = [1, 1]} : vector<8x256xf32> to vector<8x128xf32>
    %24 = vector.broadcast %10 : vector<1x128xf32> to vector<8x128xf32>
    %25 = arith.addf %23, %24 : vector<8x128xf32>
    %cst_19 = arith.constant 5.000000e-01 : f32
    %26 = vector.broadcast %cst_19 : f32 to vector<8x128xf32>
    %27 = arith.mulf %26, %25 : vector<8x128xf32>
    %28 = math.tanh %27 : vector<8x128xf32>
    %cst_20 = arith.constant 1.000000e+00 : f32
    %29 = vector.broadcast %cst_20 : f32 to vector<8x128xf32>
    %30 = arith.addf %28, %29 : vector<8x128xf32>
    %cst_21 = arith.constant 5.000000e-01 : f32
    %31 = vector.broadcast %cst_21 : f32 to vector<8x128xf32>
    %32 = arith.mulf %31, %30 : vector<8x128xf32>
    %33 = vector.broadcast %11 : vector<1x128xf32> to vector<8x128xf32>
    %34 = arith.addf %5, %33 : vector<8x128xf32>
    %35 = vector.broadcast %12 : vector<1x128xf32> to vector<8x128xf32>
    %36 = arith.addf %8, %35 : vector<8x128xf32>
    %37 = arith.mulf %22, %36 : vector<8x128xf32>
    %38 = arith.addf %34, %37 : vector<8x128xf32>
    %39 = math.tanh %38 : vector<8x128xf32>
    %c128_i32 = arith.constant 128 : i32
    %40 = arith.muli %arg0, %c128_i32 : i32
    %c128_i32_22 = arith.constant 128 : i32
    %41 = arith.addi %c128_i32_22, %40 : i32
    %42 = tpu.assume_multiple %41, 128 : i32
    %c0_23 = arith.constant 0 : index
    %43 = arith.index_cast %42 : i32 to index
    %44 = vector.load %arg2[%c0_23, %43] : memref<8x256xf32, #tpu.memory_space<vmem>>, vector<8x128xf32>
    %45 = arith.subf %44, %39 : vector<8x128xf32>
    %46 = arith.mulf %32, %45 : vector<8x128xf32>
    %47 = arith.addf %39, %46 : vector<8x128xf32>
    %c0_24 = arith.constant 0 : index
    %c0_25 = arith.constant 0 : index
    %48 = vector.load %arg5[%c0_24, %c0_25] : memref<8x128xf32, #tpu.memory_space<vmem>>, vector<8x128xf32>
    tpu.vector_store %arg5[%c0_24, %c0_25], %47 {strides = array<i32>} : memref<8x128xf32, #tpu.memory_space<vmem>>, vector<8x128xf32>,
    return
  }
  func.func @transform_0(%arg0: i32, %arg1: i32) -> (i32, i32) {
    %c0_i32 = arith.constant 0 : i32
    %c0_i32_0 = arith.constant 0 : i32
    return %arg1, %c0_i32 : i32, i32
  }
  func.func @transform_1(%arg0: i32, %arg1: i32) -> (i32, i32) {
    %c0_i32 = arith.constant 0 : i32
    %c0_i32_0 = arith.constant 0 : i32
    return %c0_i32, %arg0 : i32, i32
  }
  func.func @transform_2(%arg0: i32, %arg1: i32) -> (i32, i32) {
    %c0_i32 = arith.constant 0 : i32
    %c0_i32_0 = arith.constant 0 : i32
    return %c0_i32, %arg0 : i32, i32
  }
  func.func @transform_3(%arg0: i32, %arg1: i32) -> (i32, i32) {
    %c0_i32 = arith.constant 0 : i32
    return %arg1, %arg0 : i32, i32
  }
}

</mosaic_0001>

<bundles_post_ra>
// kernel: tpu_custom_call.1
= control target key start
LH: loop header
LB: loop body
LE: loop exit
PB: predicated region body
PF: predicated region fallthrough
CT: control target
= control target key end

     0   :  { %8 = vsyncpa [#allocation3], 0  ;;  %s717_s0 = inlined_call_operand.hbm [shape: f32[8,256], index: 0, kind: input, shape index: {}]   ;;  %s718_s1 = inlined_call_operand.hbm [shape: f32[256,384], index: 1, kind: input, shape index: {}]   ;;  %s719_s2 = inlined_call_operand.hbm [shape: f32[8,128], index: 2, kind: input, shape index: {}]   ;;  %s720_s3 = inlined_call_operand.hbm [shape: f32[8,128], index: 3, kind: output, shape index: {}]  }
   0x1   :  { %9 = vsyncpa [#allocation6], 0 }
   0x2   :  { %10 = vsyncpa [#allocation4], 0  ;;  %s632_s12 = smov [#allocation5]  }
   0x3   :  { %s26_s13 = sshll.u32 %s632_s12, 4  ;;  %s27_s13 = int_to_ptr.vmem [resolvable:$true] %s26_s13 }
   0x4   :  { %s554_s14 = scalar_lea.vmem %s27_s13, 12288  ;;  %p559_p1 = scmp.lt.s32.totalorder %s27_s13, %s27_s13 }
   0x5   :  { %p555_p0 = scmp.ne.s32.totalorder %s27_s13, %s554_s14  ;;  %p560_p2 = scmp.lt.s32.totalorder %s554_s14, %s554_s14 }
   0x7   :  { %p561_p3 = por %p560_p2, %p559_p1 }
   0x9   :  { %p562_p4 = pnand %p561_p3, %p555_p0 }
   0xb   :  { %565 = shalt.err (!%p562_p4)
}
   0xc   :  { %s633_s15 = smov 384   ;;  %s634_s16 = smov 24  }
   0xd   :  { %32 = dma.hbm_to_vmem [thread:$0]  %s718_s1, 12288, %s27_s13, [#allocation6], %s633_s15, %s633_s15, %s634_s16  }
   0xe   :  { %s635_s19 = smov [#allocation2]   ;;  %s636_s21 = smov [#allocation7]  }
   0xf   :  { %s17_s20 = sshll.u32 %s635_s19, 4  ;;  %s39_s22 = sshll.u32 %s636_s21, 4  ;;  %s18_s20 = int_to_ptr.vmem [resolvable:$true] %s17_s20  ;;  %s40_s22 = int_to_ptr.vmem [resolvable:$true] %s39_s22 }
  0x10   :  { %s574_s23 = scalar_lea.vmem %s18_s20, 256  ;;  %p579_p6 = scmp.lt.s32.totalorder %s18_s20, %s18_s20 }
  0x11   :  { %p575_p5 = scmp.ne.s32.totalorder %s18_s20, %s574_s23  ;;  %p580_p7 = scmp.lt.s32.totalorder %s574_s23, %s574_s23 }
  0x13   :  { %p581_p8 = por %p580_p7, %p579_p6 }
  0x15   :  { %p582_p9 = pnand %p581_p8, %p575_p5 }
  0x17   :  { %585 = shalt.err (!%p582_p9)
}
  0x18   :  { %20 = dma.hbm_to_vmem [thread:$0]  %s717_s0, 256, %s18_s20, [#allocation3]  }
  0x19   :  { %s594_s26 = scalar_lea.vmem %s40_s22, 128  ;;  %p599_p11 = scmp.lt.s32.totalorder %s40_s22, %s40_s22 }
  0x1a   :  { %p595_p10 = scmp.ne.s32.totalorder %s40_s22, %s594_s26  ;;  %p600_p12 = scmp.lt.s32.totalorder %s594_s26, %s594_s26 }
  0x1c   :  { %p601_p13 = por %p600_p12, %p599_p11 }
  0x1e   :  { %p602_p0 = pnand %p601_p13, %p595_p10 }
  0x20   :  { %605 = shalt.err (!%p602_p0)
}
  0x21   :  { %42 = dma.hbm_to_vmem [thread:$0]  %s719_s2, 128, %s40_s22, [#allocation6]  }
  0x22   :  { %626 = dma.done.wait [#allocation3], 256  }
  0x23   :  { %627 = vsyncadd [#allocation3], 4294967040 }
  0x24   :  { %628 = dma.done.wait [#allocation6], 12416  }
  0x25   :  { %629 = vsyncadd [#allocation6], 4294954880  ;;  %v637_v0 = vmov 0.0   ;;  %vm638_vm0 = vmmov 0   ;;  %v85_v1 = vld [vmem:[#allocation5 + $0x170] sm:$0xff]  ;;  %v84_v2 = vld [vmem:[#allocation5 + $0x168] sm:$0xff] }
  0x26   :  { %462 = vmatprep.subr.mxu1 %v637_v0  ;;  %494 = vmatprep.mubr.msk.f32.mxu1 %vm638_vm0, %v637_v0  ;;  %v83_v3 = vld [vmem:[#allocation5 + $0x158] sm:$0xff]  ;;  %v82_v4 = vld [vmem:[#allocation5 + $0x150] sm:$0xff]  ;;  %v81_v5 = vld [vmem:[#allocation5 + $0x140] sm:$0xff]  ;;  %s639_s0 = smov [#allocation8]  }
  0x27   :  { %118 = vmatprep.subr.mxu0 %v85_v1  ;;  %v80_v6 = vld [vmem:[#allocation5 + $0x138] sm:$0xff]  ;;  %v79_v7 = vld [vmem:[#allocation5 + $0x128] sm:$0xff]  ;;  %v78_v8 = vld [vmem:[#allocation5 + $0x120] sm:$0xff]  ;;  %s412_s2 = sshll.u32 %s639_s0, 4  ;;  %s413_s2 = int_to_ptr.vmem [resolvable:$true] %s412_s2 }
  0x28   :  { %119 = vmatpush1.msra.mxu0 %v84_v2  ;;  %v77_v9 = vld [vmem:[#allocation5 + $0x110] sm:$0xff]  ;;  %v205_v10 = vld [vmem:[#allocation5 + $0x178] sm:$0xff]  ;;  %v76_v11 = vld [vmem:[#allocation5 + $0x108] sm:$0xff]  ;;  %s606_s28 = scalar_lea.vmem %s413_s2, 128  ;;  %p611_p2 = scmp.lt.s32.totalorder %s413_s2, %s413_s2 }
  0x29   :  { %120 = vmatprep.subr.mxu0 %v83_v3  ;;  %463 = vmatpush3.msra.mxu1 %v205_v10  ;;  %v204_v12 = vld [vmem:[#allocation5 + $0x160] sm:$0xff]  ;;  %v75_v13 = vld [vmem:[#allocation5 + $0xf8] sm:$0xff]  ;;  %v203_v14 = vld [vmem:[#allocation5 + $0x148] sm:$0xff]  ;;  %p607_p1 = scmp.ne.s32.totalorder %s413_s2, %s606_s28  ;;  %p612_p3 = scmp.lt.s32.totalorder %s606_s28, %s606_s28 }
  0x2a   :  { %121 = vmatpush1.msra.mxu0 %v82_v4  ;;  %464 = vmatprep.subr.mxu1 %v637_v0  ;;  %v74_v15 = vld [vmem:[#allocation5 + $0xf0] sm:$0xff]  ;;  %v73_v16 = vld [vmem:[#allocation5 + $0xe0] sm:$0xff]  ;;  %v72_v18 = vld [vmem:[#allocation5 + $0xd8] sm:$0xff] }
  0x2b   :  { %122 = vmatprep.subr.mxu0 %v81_v5  ;;  %465 = vmatpush3.msra.mxu1 %v204_v12  ;;  %v202_v17 = vld [vmem:[#allocation5 + $0x130] sm:$0xff]  ;;  %v71_v19 = vld [vmem:[#allocation5 + $0xc8] sm:$0xff]  ;;  %v201_v20 = vld [vmem:[#allocation5 + $0x118] sm:$0xff]  ;;  %p613_p4 = por %p612_p3, %p611_p2 }
  0x2c   :  { %123 = vmatpush1.msra.mxu0 %v80_v6  ;;  %466 = vmatprep.subr.mxu1 %v637_v0  ;;  %v70_v21 = vld [vmem:[#allocation5 + $0xc0] sm:$0xff]  ;;  %v69_v22 = vld [vmem:[#allocation5 + $0xb0] sm:$0xff]  ;;  %v68_v24 = vld [vmem:[#allocation5 + $0xa8] sm:$0xff] }
  0x2d   :  { %124 = vmatprep.subr.mxu0 %v79_v7  ;;  %467 = vmatpush3.msra.mxu1 %v203_v14  ;;  %v200_v23 = vld [vmem:[#allocation5 + $0x100] sm:$0xff]  ;;  %v67_v25 = vld [vmem:[#allocation5 + $0x98] sm:$0xff]  ;;  %v199_v26 = vld [vmem:[#allocation5 + $0xe8] sm:$0xff]  ;;  %p614_p5 = pnand %p613_p4, %p607_p1 }
  0x2e   :  { %125 = vmatpush1.msra.mxu0 %v78_v8  ;;  %468 = vmatprep.subr.mxu1 %v637_v0  ;;  %v66_v27 = vld [vmem:[#allocation5 + $0x90] sm:$0xff]  ;;  %v65_v28 = vld [vmem:[#allocation5 + $0x80] sm:$0xff]  ;;  %v64_v30 = vld [vmem:[#allocation5 + $0x78] sm:$0xff] }
  0x2f   :  { %126 = vmatprep.subr.mxu0 %v77_v9  ;;  %469 = vmatpush3.msra.mxu1 %v202_v17  ;;  %v198_v29 = vld [vmem:[#allocation5 + $0xd0] sm:$0xff]  ;;  %v63_v31 = vld [vmem:[#allocation5 + $0x68] sm:$0xff]  ;;  %v197_v32 = vld [vmem:[#allocation5 + $0xb8] sm:$0xff] }
  0x30   :  { %127 = vmatpush1.msra.mxu0 %v76_v11  ;;  %470 = vmatprep.subr.mxu1 %v637_v0  ;;  %v62_v33 = vld [vmem:[#allocation5 + $0x60] sm:$0xff]  ;;  %v61_v34 = vld [vmem:[#allocation5 + $0x50] sm:$0xff]  ;;  %v60_v36 = vld [vmem:[#allocation5 + $0x48] sm:$0xff] }
  0x31   :  { %128 = vmatprep.subr.mxu0 %v75_v13  ;;  %471 = vmatpush3.msra.mxu1 %v201_v20  ;;  %v196_v35 = vld [vmem:[#allocation5 + $0xa0] sm:$0xff]  ;;  %v59_v37 = vld [vmem:[#allocation5 + $0x38] sm:$0xff]  ;;  %v195_v38 = vld [vmem:[#allocation5 + $0x88] sm:$0xff] }
  0x32   :  { %129 = vmatpush1.msra.mxu0 %v74_v15  ;;  %472 = vmatprep.subr.mxu1 %v637_v0  ;;  %v58_v39 = vld [vmem:[#allocation5 + $0x30] sm:$0xff]  ;;  %v57_v40 = vld [vmem:[#allocation5 + $0x20] sm:$0xff]  ;;  %v56_v42 = vld [vmem:[#allocation5 + $0x18] sm:$0xff] }
  0x33   :  { %130 = vmatprep.subr.mxu0 %v73_v16  ;;  %473 = vmatpush3.msra.mxu1 %v200_v23  ;;  %v194_v41 = vld [vmem:[#allocation5 + $0x70] sm:$0xff]  ;;  %v55_v43 = vld [vmem:[#allocation5 + $0x8] sm:$0xff]  ;;  %v193_v44 = vld [vmem:[#allocation5 + $0x58] sm:$0xff] }
  0x34   :  { %131 = vmatpush1.msra.mxu0 %v72_v18  ;;  %474 = vmatprep.subr.mxu1 %v637_v0  ;;  %v54_v45 = vld [vmem:[#allocation5] sm:$0xff]  ;;  %v117_v46 = vld [vmem:[#allocation5 + $0x2f0] sm:$0xff]  ;;  %v116_v48 = vld [vmem:[#allocation5 + $0x2e8] sm:$0xff] }
  0x35   :  { %132 = vmatprep.subr.mxu0 %v71_v19  ;;  %475 = vmatpush3.msra.mxu1 %v199_v26  ;;  %v192_v47 = vld [vmem:[#allocation5 + $0x40] sm:$0xff]  ;;  %v115_v49 = vld [vmem:[#allocation5 + $0x2d8] sm:$0xff]  ;;  %v191_v50 = vld [vmem:[#allocation5 + $0x28] sm:$0xff] }
  0x36   :  { %133 = vmatpush1.msra.mxu0 %v70_v21  ;;  %476 = vmatprep.subr.mxu1 %v637_v0  ;;  %v114_v51 = vld [vmem:[#allocation5 + $0x2d0] sm:$0xff]  ;;  %v113_v52 = vld [vmem:[#allocation5 + $0x2c0] sm:$0xff]  ;;  %v112_v54 = vld [vmem:[#allocation5 + $0x2b8] sm:$0xff] }
  0x37   :  { %134 = vmatprep.subr.mxu0 %v69_v22  ;;  %477 = vmatpush3.msra.mxu1 %v198_v29  ;;  %v190_v53 = vld [vmem:[#allocation5 + $0x10] sm:$0xff]  ;;  %v111_v55 = vld [vmem:[#allocation5 + $0x2a8] sm:$0xff]  ;;  %v110_v57 = vld [vmem:[#allocation5 + $0x2a0] sm:$0xff] }
  0x38   :  { %135 = vmatpush1.msra.mxu0 %v68_v24  ;;  %478 = vmatprep.subr.mxu1 %v637_v0  ;;  %v687_v56 = vld [vmem:[#allocation2] sm:$0xff]  ;;  %v221_v58 = vld [vmem:[#allocation5 + $0x2f8] sm:$0xff]  ;;  %v108_v60 = vld [vmem:[#allocation5 + $0x288] sm:$0xff] }
  0x39   :  { %136 = vmatprep.subr.mxu0 %v67_v25  ;;  %479 = vmatpush3.msra.mxu1 %v197_v32  ;;  %v109_v59 = vld [vmem:[#allocation5 + $0x290] sm:$0xff]  ;;  %v220_v61 = vld [vmem:[#allocation5 + $0x2e0] sm:$0xff]  ;;  %v107_v62 = vld [vmem:[#allocation5 + $0x278] sm:$0xff] }
  0x3a   :  { %137 = vmatpush1.msra.mxu0 %v66_v27  ;;  %480 = vmatprep.subr.mxu1 %v637_v0  ;;  %v106_v63 = vld [vmem:[#allocation5 + $0x270] sm:$0xff]  ;;  %v219_v1 = vld [vmem:[#allocation5 + $0x2c8] sm:$0xff]  ;;  %v105_v2 = vld [vmem:[#allocation5 + $0x260] sm:$0xff] }
  0x3b   :  { %138 = vmatprep.subr.mxu0 %v65_v28  ;;  %481 = vmatpush3.msra.mxu1 %v196_v35  ;;  %v104_v3 = vld [vmem:[#allocation5 + $0x258] sm:$0xff]  ;;  %v218_v4 = vld [vmem:[#allocation5 + $0x2b0] sm:$0xff]  ;;  %v103_v5 = vld [vmem:[#allocation5 + $0x248] sm:$0xff] }
  0x3c   :  { %139 = vmatpush1.msra.mxu0 %v64_v30  ;;  %482 = vmatprep.subr.mxu1 %v637_v0  ;;  %v102_v6 = vld [vmem:[#allocation5 + $0x240] sm:$0xff]  ;;  %v217_v7 = vld [vmem:[#allocation5 + $0x298] sm:$0xff]  ;;  %v101_v8 = vld [vmem:[#allocation5 + $0x230] sm:$0xff] }
  0x3d   :  { %140 = vmatprep.subr.mxu0 %v63_v31  ;;  %483 = vmatpush3.msra.mxu1 %v195_v38  ;;  %v100_v9 = vld [vmem:[#allocation5 + $0x228] sm:$0xff]  ;;  %v216_v10 = vld [vmem:[#allocation5 + $0x280] sm:$0xff]  ;;  %v99_v11 = vld [vmem:[#allocation5 + $0x218] sm:$0xff] }
  0x3e   :  { %141 = vmatpush1.msra.mxu0 %v62_v33  ;;  %484 = vmatprep.subr.mxu1 %v637_v0  ;;  %v98_v12 = vld [vmem:[#allocation5 + $0x210] sm:$0xff]  ;;  %v696_v13 = vld [vmem:[#allocation2 + $0x8] sm:$0xff]  ;;  %v97_v14 = vld [vmem:[#allocation5 + $0x200] sm:$0xff] }
  0x3f   :  { %142 = vmatprep.subr.mxu0 %v61_v34  ;;  %485 = vmatpush3.msra.mxu1 %v194_v41  ;;  %v215_v15 = vld [vmem:[#allocation5 + $0x268] sm:$0xff]  ;;  %v96_v16 = vld [vmem:[#allocation5 + $0x1f8] sm:$0xff]  ;;  %v214_v18 = vld [vmem:[#allocation5 + $0x250] sm:$0xff] }
  0x40   :  { %143 = vmatpush1.msra.mxu0 %v60_v36  ;;  %486 = vmatprep.subr.mxu1 %v637_v0  ;;  %v95_v17 = vld [vmem:[#allocation5 + $0x1e8] sm:$0xff]  ;;  %v94_v19 = vld [vmem:[#allocation5 + $0x1e0] sm:$0xff]  ;;  %v93_v20 = vld [vmem:[#allocation5 + $0x1d0] sm:$0xff] }
  0x41   :  { %144 = vmatprep.subr.mxu0 %v59_v37  ;;  %487 = vmatpush3.msra.mxu1 %v193_v44  ;;  %v213_v21 = vld [vmem:[#allocation5 + $0x238] sm:$0xff]  ;;  %v92_v22 = vld [vmem:[#allocation5 + $0x1c8] sm:$0xff]  ;;  %v212_v24 = vld [vmem:[#allocation5 + $0x220] sm:$0xff] }
  0x42   :  { %145 = vmatpush1.msra.mxu0 %v58_v39  ;;  %488 = vmatprep.subr.mxu1 %v637_v0  ;;  %v91_v23 = vld [vmem:[#allocation5 + $0x1b8] sm:$0xff]  ;;  %v90_v25 = vld [vmem:[#allocation5 + $0x1b0] sm:$0xff]  ;;  %v89_v26 = vld [vmem:[#allocation5 + $0x1a0] sm:$0xff] }
  0x43   :  { %146 = vmatprep.subr.mxu0 %v57_v40  ;;  %489 = vmatpush3.msra.mxu1 %v192_v47  ;;  %v211_v27 = vld [vmem:[#allocation5 + $0x208] sm:$0xff]  ;;  %v88_v28 = vld [vmem:[#allocation5 + $0x198] sm:$0xff]  ;;  %v210_v30 = vld [vmem:[#allocation5 + $0x1f0] sm:$0xff] }
  0x44   :  { %147 = vmatpush1.msra.mxu0 %v56_v42  ;;  %490 = vmatprep.subr.mxu1 %v637_v0  ;;  %v87_v29 = vld [vmem:[#allocation5 + $0x188] sm:$0xff]  ;;  %v86_v31 = vld [vmem:[#allocation5 + $0x180] sm:$0xff]  ;;  %v209_v32 = vld [vmem:[#allocation5 + $0x1d8] sm:$0xff] }
  0x45   :  { %148 = vmatprep.subr.mxu0 %v55_v43  ;;  %491 = vmatpush3.msra.mxu1 %v191_v50  ;;  %v208_v33 = vld [vmem:[#allocation5 + $0x1c0] sm:$0xff]  ;;  %v207_v34 = vld [vmem:[#allocation5 + $0x1a8] sm:$0xff]  ;;  %v206_v35 = vld [vmem:[#allocation5 + $0x190] sm:$0xff] }
  0x46   :  { %149 = vmatpush1.msra.mxu0 %v54_v45  ;;  %492 = vmatprep.subr.mxu1 %v637_v0  ;;  %v424_v38 = vld [vmem:[#allocation7] ss:$0 sm:$0xff]  ;;  %v425_v45 = vld [vmem:[#allocation7 + $0x1] ss:$0 sm:$0xff]  ;;  %v427_v47 = vld [vmem:[#allocation7 + $0x3] ss:$0 sm:$0xff] }
  0x47   :  { %150 = vmatprep.subr.mxu0 %v117_v46  ;;  %493 = vmatpush3.msra.mxu1 %v190_v53 }
  0x48   :  { %151 = vmatpush2.msra.mxu0 %v116_v48  ;;  %497 = vmatprep.subr.mxu1 %v637_v0 }
  0x49   :  { %152 = vmatprep.subr.mxu0 %v115_v49  ;;  %495 = vmatmul.mubr.f32.vlgmr.msra.gmra.mxu1 %v687_v56 }
  0x4a   :  { %153 = vmatpush2.msra.mxu0 %v114_v51  ;;  %498 = vmatpush3.msra.mxu1 %v221_v58  ;;  %v426_v51 = vld [vmem:[#allocation7 + $0x2] ss:$0 sm:$0xff] }
  0x4b   :  { %154 = vmatprep.subr.mxu0 %v113_v52  ;;  %499 = vmatprep.subr.mxu1 %v637_v0 }
  0x4c   :  { %155 = vmatpush2.msra.mxu0 %v112_v54  ;;  %500 = vmatpush3.msra.mxu1 %v220_v61 }
  0x4d   :  { %156 = vmatprep.subr.mxu0 %v111_v55  ;;  %501 = vmatprep.subr.mxu1 %v637_v0 }
  0x4e   :  { %157 = vmatpush2.msra.mxu0 %v110_v57  ;;  %502 = vmatpush3.msra.mxu1 %v219_v1 }
  0x4f   :  { %158 = vmatprep.subr.mxu0 %v109_v59  ;;  %503 = vmatprep.subr.mxu1 %v637_v0 }
  0x50   :  { %159 = vmatpush2.msra.mxu0 %v108_v60  ;;  %504 = vmatpush3.msra.mxu1 %v218_v4 }
  0x51   :  { %160 = vmatprep.subr.mxu0 %v107_v62  ;;  %505 = vmatprep.subr.mxu1 %v637_v0 }
  0x52   :  { %161 = vmatpush2.msra.mxu0 %v106_v63  ;;  %506 = vmatpush3.msra.mxu1 %v217_v7 }
  0x53   :  { %162 = vmatprep.subr.mxu0 %v105_v2  ;;  %507 = vmatprep.subr.mxu1 %v637_v0 }
  0x54   :  { %163 = vmatpush2.msra.mxu0 %v104_v3  ;;  %508 = vmatpush3.msra.mxu1 %v216_v10 }
  0x55   :  { %164 = vmatprep.subr.mxu0 %v103_v5  ;;  %509 = vmatprep.subr.mxu1 %v637_v0 }
  0x56   :  { %165 = vmatpush2.msra.mxu0 %v102_v6  ;;  %182 = vmatprep.mubr.f32.mxu0 %v696_v13 }
  0x57   :  { %166 = vmatprep.subr.mxu0 %v101_v8  ;;  %510 = vmatpush3.msra.mxu1 %v215_v15 }
  0x58   :  { %167 = vmatpush2.msra.mxu0 %v100_v9  ;;  %511 = vmatprep.subr.mxu1 %v637_v0 }
  0x59   :  { %168 = vmatprep.subr.mxu0 %v99_v11  ;;  %512 = vmatpush3.msra.mxu1 %v214_v18 }
  0x5a   :  { %169 = vmatpush2.msra.mxu0 %v98_v12  ;;  %513 = vmatprep.subr.mxu1 %v637_v0 }
  0x5b   :  { %170 = vmatprep.subr.mxu0 %v97_v14  ;;  %514 = vmatpush3.msra.mxu1 %v213_v21 }
  0x5c   :  { %171 = vmatpush2.msra.mxu0 %v96_v16  ;;  %515 = vmatprep.subr.mxu1 %v637_v0 }
  0x5d   :  { %172 = vmatprep.subr.mxu0 %v95_v17  ;;  %516 = vmatpush3.msra.mxu1 %v212_v24 }
  0x5e   :  { %173 = vmatpush2.msra.mxu0 %v94_v19  ;;  %517 = vmatprep.subr.mxu1 %v637_v0 }
  0x5f   :  { %174 = vmatprep.subr.mxu0 %v93_v20  ;;  %518 = vmatpush3.msra.mxu1 %v211_v27 }
  0x60   :  { %175 = vmatpush2.msra.mxu0 %v92_v22  ;;  %519 = vmatprep.subr.mxu1 %v637_v0 }
  0x61   :  { %176 = vmatprep.subr.mxu0 %v91_v23  ;;  %520 = vmatpush3.msra.mxu1 %v210_v30 }
  0x62   :  { %177 = vmatpush2.msra.mxu0 %v90_v25  ;;  %521 = vmatprep.subr.mxu1 %v637_v0 }
  0x63   :  { %178 = vmatprep.subr.mxu0 %v89_v26  ;;  %522 = vmatpush3.msra.mxu1 %v209_v32 }
  0x64   :  { %179 = vmatpush2.msra.mxu0 %v88_v28  ;;  %523 = vmatprep.subr.mxu1 %v637_v0 }
  0x65   :  { %180 = vmatprep.subr.mxu0 %v87_v29  ;;  %529 = vmatprep.mubr.msk.f32.mxu1 %vm638_vm0, %v637_v0 }
  0x66   :  { %181 = vmatpush2.msra.mxu0 %v86_v31  ;;  %524 = vmatpush3.msra.mxu1 %v208_v33 }
  0x67   :  { %183 = vmatmul.mubr.f32.vlgmr.msra.gmra.mxu0 %v687_v56  ;;  %525 = vmatprep.subr.mxu1 %v637_v0 }
  0x68   :  { %526 = vmatpush3.msra.mxu1 %v207_v34 }
  0x69   :  { %527 = vmatprep.subr.mxu1 %v637_v0 }
  0x6a   :  { %528 = vmatpush3.msra.mxu1 %v206_v35 }
  0x6b   :  { %530 = vmatmul.mubr.f32.vlgmr.msra.gmra.mxu1 %v696_v13 }
 0x109   :  { %v314_v36 = vpop.f32.mrf.mxu1 }
 0x10a   :  { %v315_v53 = vadd.f32 %v426_v51, %v314_v36 }
 0x10b   :  { %v496_v37 = vpop.f32.mrf.mxu1 }
 0x127   :  { %v184_v39 = vpop.f32.mrf.mxu0 }
 0x128   :  { %v230_v40 = vadd.f32 %v424_v38, %v184_v39 }
 0x129   :  { %v186_v44 = vpop.f32.mrf.mxu0 }
 0x12a   :  { %v231_v41 = vmul.f32 0.5, %v230_v40  ;;  %v239_v46 = vadd.f32 %v425_v45, %v186_v44 }
 0x12b   :  { %v388_v42 = vpop.f32.mrf.mxu1 }
 0x12c   :  { %540 = vtanh.f32 %v231_v41  ;;  %v240_v48 = vmul.f32 0.5, %v239_v46  ;;  %v389_v0 = vadd.f32 %v427_v47, %v388_v42 }
 0x12d   :  { %v531_v43 = vpop.f32.mrf.mxu1 }
 0x12e   :  { %542 = vtanh.f32 %v240_v48 }
 0x139   :  { %v541_v49 = vpop.eup %540 }
 0x13a   :  { %v233_v50 = vadd.f32 1.0, %v541_v49 }
 0x13b   :  { %v543_v56 = vpop.eup %542 }
 0x13c   :  { %v234_v52 = vmul.f32 0.5, %v233_v50  ;;  %v242_v57 = vadd.f32 1.0, %v543_v56 }
 0x13e   :  { %v392_v54 = vmul.f32 %v389_v0, %v234_v52  ;;  %v243_v59 = vmul.f32 0.5, %v242_v57 }
 0x140   :  { %v393_v55 = vadd.f32 %v392_v54, %v315_v53 }
 0x142   :  { %544 = vtanh.f32 %v393_v55 }
 0x14f   :  { %v545_v58 = vpop.eup %544 }
 0x150   :  { %v402_v60 = vsub.f32 %v696_v13, %v545_v58 }
 0x152   :  { %v403_v61 = vmul.f32 %v402_v60, %v243_v59 }
 0x154   :  { %v404_v62 = vadd.f32 %v545_v58, %v403_v61 }
 0x156   :  { %405 = vst [vmem:[#allocation8] sm:$0xff] %v404_v62 }
 0x157   :  { %617 = shalt.err (!%p614_p5)
}
 0x158   :  { %415 = dma.vmem_to_hbm [thread:$0]  %s413_s2, 128, %s720_s3, [#allocation4]  }
 0x159   :  { %630 = dma.done.wait [#allocation4], 128  }
 0x15a   :  { %631 = vsyncadd [#allocation4], 4294967168 }
 0x15b   :  { %419 = vsyncpa [#allocation3], 1 }
 0x15c   :  { %420 = vsyncpa [#allocation6], 1 }
 0x15d   :  { %421 = vsyncpa [#allocation4], 1 }

</bundles_post_ra>
